<compile_context>
chip_gen: v6e
topology: v6e:2x2x1
jax: 0.10.0
libtpu: 0.0.40
codegen_flags: <defaults>
</compile_context>

<pallas_src>
import functools

import jax
import jax.numpy as jnp
from jax.experimental import pallas as pl
from jax.experimental.pallas import tpu as pltpu


_INV_SQRT2 = 0.7071067811865476


def _gelu_exact(x):
    # PyTorch nn.GELU() default is the exact (erf-based) formulation.
    # TODO(synk): for bf16 activations on v6e/v7x the erf polynomial could run
    # in bf16 on the VPU for ~2x VALU throughput; kept in f32 for exactness.
    return 0.5 * x * (1.0 + jax.lax.erf(x * _INV_SQRT2))


# --------------------------------------------------------------------------
# Kernels
# --------------------------------------------------------------------------

def mlp_resident_kernel(x_ref, w1_ref, b1_ref, w2_ref, b2_ref, o_ref):
    # Whole weight matrices live in VMEM as single-copy operands; each grid
    # step processes one (tm, C) row tile end-to-end (no accumulator needed).
    h = jnp.dot(x_ref[...], w1_ref[...], preferred_element_type=jnp.float32)
    h = _gelu_exact(h + b1_ref[...].astype(jnp.float32))
    out = jnp.dot(h.astype(w2_ref.dtype), w2_ref[...],
                  preferred_element_type=jnp.float32)
    # TODO(synk): training-mode dropout (RNG + mask) is not implemented;
    # eval-mode dropout is the identity, matching inference semantics.
    o_ref[...] = (out + b2_ref[...].astype(jnp.float32)).astype(o_ref.dtype)


def mlp_streaming_kernel(x_ref, w1_ref, b1_ref, w2_ref, b2_ref, o_ref, acc_ref):
    # x_ref:  (TM, C)      row tile of the flattened input
    # w1_ref: (C, TN)      c_fc weight chunk
    # b1_ref: (1, TN)      c_fc bias chunk
    # w2_ref: (TN, C)      c_proj weight chunk
    # b2_ref: (1, C)       c_proj bias (untiled, single VMEM copy)
    # o_ref:  (TM, C)      output tile (stored on the last hidden chunk)
    # acc_ref:(TM, C) f32  accumulator scratch
    j = pl.program_id(1)

    @pl.when(j == 0)
    def _():
        acc_ref[...] = jnp.zeros_like(acc_ref)

    h = jnp.dot(x_ref[...], w1_ref[...], preferred_element_type=jnp.float32)
    h = _gelu_exact(h + b1_ref[...].astype(jnp.float32))
    acc_ref[...] += jnp.dot(h.astype(w2_ref.dtype), w2_ref[...],
                            preferred_element_type=jnp.float32)

    @pl.when(j == pl.num_programs(1) - 1)
    def _():
        o_ref[...] = (acc_ref[...] + b2_ref[...].astype(jnp.float32)).astype(o_ref.dtype)


# --------------------------------------------------------------------------
# Host-side configuration helpers (all trace-time Python on static shapes)
# --------------------------------------------------------------------------

def _round_up(a, m):
    return (a + m - 1) // m * m


def _chip_config():
    """Returns (generation tag, physical VMEM bytes, MXU-native dim, tm target)."""
    kind = ""
    try:
        kind = jax.devices()[0].device_kind.lower()
    except Exception:
        pass
    if "v7" in kind:
        gen = "v7x"
    elif "v6" in kind:
        gen = "v6e"
    elif "v5" in kind:
        gen = "v5e"
    else:
        gen = "unknown"

    vmem = None
    try:
        vmem = int(pltpu.get_tpu_info().vmem_capacity_bytes)
    except Exception:
        vmem = None
    if not vmem:
        vmem = (64 << 20) if gen in ("v7x", "unknown") else (128 << 20)

    align = 128 if gen == "v5e" else 256          # native MXU dimension
    # Row-tile target sized to sit at/above the per-chip roofline knee:
    #   v5e ~240 FLOP/B -> 512, v6e ~680 -> 1024, v7x ~310 -> 512.
    tm_target = {"v5e": 512, "v6e": 1024, "v7x": 512}.get(gen, 512)
    return gen, vmem, align, tm_target


def _resident_vmem(tm, C, H, x_bytes, w_bytes):
    weights = (2 * C * H + H + C) * w_bytes        # single resident copy
    io = 2 * (2 * tm * C * x_bytes)                # x & out tiles, double-buffered
    hidden = tm * H * (4 + w_bytes)                # f32 h + downcast copy for matmul 2
    return weights + io + hidden


def _streaming_vmem(tm, tn, C, H, x_bytes, w_bytes, wbuf):
    weights = wbuf * (2 * C * tn + tn) * w_bytes + C * w_bytes   # chunks + resident b2
    io = 2 * (2 * tm * C * x_bytes)
    acc = tm * C * 4
    hidden = tm * tn * (4 + w_bytes)
    return weights + io + acc + hidden


def _choose_tm(M, sub, align, target, want_two_tiles):
    m_ceil = _round_up(M, sub)
    if m_ceil <= target:
        tm = m_ceil
        if want_two_tiles and m_ceil >= 2 * sub:
            tm = _round_up((m_ceil + 1) // 2, sub)   # give both v7x TCs a tile
        return tm
    step = align if target >= align else sub
    tm = _round_up(target, step)
    if M % tm != 0 and M > tm:
        # Prefer a nearby tile that divides M exactly -> skip the jnp.pad copy.
        cand = tm - step
        while cand >= max(step, tm // 2):
            if M % cand == 0:
                return cand
            cand -= step
    return tm


def _shrink_tm(tm, sub, align):
    nxt = tm // 2
    if nxt >= align:
        nxt = _round_up(nxt, align)
    else:
        nxt = _round_up(max(nxt, sub), sub)
    return nxt if nxt < tm else tm


# --------------------------------------------------------------------------
# Public forward
# --------------------------------------------------------------------------

@functools.partial(jax.jit, static_argnames=("tm", "tn"))
def mlp_forward(x, w1, b1, w2, b2, tm=None, tn=None):
    """x: (B, T, C) -> (B, T, C). Fused c_fc -> GELU -> c_proj in one kernel."""
    B, T, C = x.shape
    H = w1.shape[1]  # 4*C
    assert w1.shape == (C, H) and w2.shape == (H, C)
    assert b1.shape == (1, H) and b2.shape == (1, C)

    gen, vmem_bytes, align, tm_target = _chip_config()
    # ~85% of physical VMEM: ≈54 MiB on v7x, ≈109 MiB on v5e/v6e -> headroom
    # for compiler internal scratch / semaphores.
    vmem_cap = int(vmem_bytes * 0.85)

    x_bytes = x.dtype.itemsize
    w_bytes = w1.dtype.itemsize
    sub = 16 if x_bytes < 4 else 8

    x2d = x.reshape(B * T, C)
    M = x2d.shape[0]

    tm_req = tm_target if tm is None else max(sub, _round_up(tm, sub))
    tm_eff = _choose_tm(M, sub, align, tm_req, want_two_tiles=(gen == "v7x"))

    # ---- resident vs streaming decision (VMEM-aware) -----------------------
    weight_bytes = (2 * C * H + H + C) * w_bytes
    force_stream = (tn is not None) and (tn < H)
    use_resident = (weight_bytes <= vmem_cap // 3) and not force_stream

    if use_resident:
        # Shrink the row tile until weights + tiles + (tm,H) GELU temps fit.
        while tm_eff > sub and _resident_vmem(tm_eff, C, H, x_bytes, w_bytes) > vmem_cap:
            nxt = _shrink_tm(tm_eff, sub, align)
            if nxt >= tm_eff:
                break
            tm_eff = nxt
        if _resident_vmem(tm_eff, C, H, x_bytes, w_bytes) > vmem_cap:
            use_resident = False

    tn_eff = None
    if not use_resident:
        if tn is None or tn >= H:
            for cand in (512, 256, 128):            # MXU/lane aligned divisors
                if H % cand == 0:
                    tn_eff = cand
                    break
            if tn_eff is None:
                tn_eff = H                           # cannot chunk cleanly
        else:
            tn_eff = tn
        assert H % tn_eff == 0, "hidden dim must be divisible by the hidden tile"
        if tn_eff != H:
            assert tn_eff % 128 == 0, "partial hidden tiles must be lane-aligned (x128)"
        if tn_eff == H:
            use_resident = True                      # single chunk == resident path

    wbuf = 3 if gen == "v5e" else 2
    if not use_resident:
        while tm_eff > sub and _streaming_vmem(tm_eff, tn_eff, C, H,
                                               x_bytes, w_bytes, wbuf) > vmem_cap:
            nxt = _shrink_tm(tm_eff, sub, align)
            if nxt >= tm_eff:
                break
            tm_eff = nxt

    # ---- pad ragged rows up to the tile boundary (tail only, often skipped) --
    m_pad = _round_up(M, tm_eff)
    if m_pad != M:
        x2d = jnp.pad(x2d, ((0, m_pad - M), (0, 0)))

    out_shape = jax.ShapeDtypeStruct((m_pad, C), x.dtype)
    x_spec_1d = pl.BlockSpec((tm_eff, C), lambda i: (i, 0))
    vmem_full = pl.BlockSpec(memory_space=pltpu.MemorySpace.VMEM)

    if use_resident:
        est = _resident_vmem(tm_eff, C, H, x_bytes, w_bytes)
        vmem_limit = int(min(max(int(est * 1.25) + (4 << 20), 32 << 20), vmem_cap))
        out2d = pl.pallas_call(
            mlp_resident_kernel,
            out_shape=out_shape,
            grid_spec=pltpu.PrefetchScalarGridSpec(
                num_scalar_prefetch=0,
                grid=(m_pad // tm_eff,),
                in_specs=[x_spec_1d, vmem_full, vmem_full, vmem_full, vmem_full],
                out_specs=pl.BlockSpec((tm_eff, C), lambda i: (i, 0)),
            ),
            compiler_params=pltpu.CompilerParams(
                dimension_semantics=("parallel",),
                vmem_limit_bytes=vmem_limit,
            ),
        )(x2d, w1, b1, w2, b2)
    else:
        n_h = H // tn_eff
        est = _streaming_vmem(tm_eff, tn_eff, C, H, x_bytes, w_bytes, wbuf)
        vmem_limit = int(min(max(int(est * 1.25) + (4 << 20), 32 << 20), vmem_cap))

        def _chunk_spec(shape, index_map):
            if gen == "v5e":
                try:  # deeper buffering hides weight-chunk DMA on the small MXU
                    return pl.BlockSpec(shape, index_map, pipeline_mode=pl.Buffered(3))
                except Exception:
                    pass
            return pl.BlockSpec(shape, index_map)

        out2d = pl.pallas_call(
            mlp_streaming_kernel,
            out_shape=out_shape,
            grid_spec=pltpu.PrefetchScalarGridSpec(
                num_scalar_prefetch=0,
                grid=(m_pad // tm_eff, n_h),
                in_specs=[
                    pl.BlockSpec((tm_eff, C), lambda i, j: (i, 0)),   # x rows
                    _chunk_spec((C, tn_eff), lambda i, j: (0, j)),    # W1 chunk
                    _chunk_spec((1, tn_eff), lambda i, j: (0, j)),    # b1 chunk
                    _chunk_spec((tn_eff, C), lambda i, j: (j, 0)),    # W2 chunk
                    vmem_full,                                        # b2 (single copy)
                ],
                out_specs=pl.BlockSpec((tm_eff, C), lambda i, j: (i, 0)),
                scratch_shapes=[pltpu.VMEM((tm_eff, C), jnp.float32)],
            ),
            compiler_params=pltpu.CompilerParams(
                dimension_semantics=("parallel", "arbitrary"),
                vmem_limit_bytes=vmem_limit,
            ),
        )(x2d, w1, b1, w2, b2)

    return out2d[:M].reshape(B, T, C)


# --------------------------------------------------------------------------
# Reference / demo
# --------------------------------------------------------------------------

def init_params(key, n_embed, dtype=jnp.float32):
    """Deterministic init matching nn.Linear shapes (stored transposed)."""
    k1, k2, k3, k4 = jax.random.split(key, 4)
    h = 4 * n_embed
    lim1 = 1.0 / (n_embed ** 0.5)
    lim2 = 1.0 / (h ** 0.5)
    w1 = jax.random.uniform(k1, (n_embed, h), dtype, -lim1, lim1)   # c_fc.weight.T
    b1 = jax.random.uniform(k2, (1, h), dtype, -lim1, lim1)         # c_fc.bias
    w2 = jax.random.uniform(k3, (h, n_embed), dtype, -lim2, lim2)   # c_proj.weight.T
    b2 = jax.random.uniform(k4, (1, n_embed), dtype, -lim2, lim2)   # c_proj.bias
    return w1, b1, w2, b2


def mlp_reference(x, w1, b1, w2, b2):
    h = _gelu_exact(x @ w1 + b1[0])
    return h @ w2 + b2[0]


if __name__ == "__main__":
    # Small lane-dense demo: n_embed=128 -> hidden=512, B*T=24 (ragged rows).
    B, T, C = 2, 12, 128
    key = jax.random.PRNGKey(0)
    kx, kp = jax.random.split(key)
    x = jax.random.normal(kx, (B, T, C), jnp.float32)
    w1, b1, w2, b2 = init_params(kp, C)

    ref = mlp_reference(x, w1, b1, w2, b2)

    # Auto path: weights (~0.5 MiB) comfortably resident -> resident kernel,
    # row tile chosen per detected TPU generation.
    out_auto = mlp_forward(x, w1, b1, w2, b2)
    jax.block_until_ready(out_auto)

    # Forced streaming path: small row tile + 4 hidden chunks, exercising the
    # accumulator / pl.when init-finalize logic.
    out_stream = mlp_forward(x, w1, b1, w2, b2, tm=16, tn=128)
    jax.block_until_ready(out_stream)

    for out in (out_auto, out_stream):
        assert out.shape == (B, T, C)
        assert jnp.allclose(out, ref, atol=2e-4, rtol=2e-4), "mismatch vs reference"
    print("KERNEL_OK")
</pallas_src>

<mosaic_0001>
module attributes {stable_mosaic.version = 11 : i64} {
  func.func @mlp_resident_kernel(%arg0: i32, %arg1: memref<24x128xf32, #tpu.memory_space<vmem>>, %arg2: memref<128x512xf32, #tpu.memory_space<vmem>>, %arg3: memref<1x512xf32, #tpu.memory_space<vmem>>, %arg4: memref<512x128xf32, #tpu.memory_space<vmem>>, %arg5: memref<1x128xf32, #tpu.memory_space<vmem>>, %arg6: memref<24x128xf32, #tpu.memory_space<vmem>>) attributes {dimension_semantics = [#tpu.dimension_semantics<parallel>], iteration_bounds = array<i64: 1>, scalar_prefetch = 0 : i64, scratch_operands = 0 : i64, tpu.core_type = #tpu.core_type<tc>, window_params = [{transform_indices = @transform_0, window_bounds = array<i64: 24, 128>}, {pipeline_mode = #tpu.pipeline_mode<synchronous>, transform_indices = @transform_1, window_bounds = array<i64: 128, 512>}, {pipeline_mode = #tpu.pipeline_mode<synchronous>, transform_indices = @transform_2, window_bounds = array<i64: 1, 512>}, {pipeline_mode = #tpu.pipeline_mode<synchronous>, transform_indices = @transform_3, window_bounds = array<i64: 512, 128>}, {pipeline_mode = #tpu.pipeline_mode<synchronous>, transform_indices = @transform_4, window_bounds = array<i64: 1, 128>}, {transform_indices = @transform_5, window_bounds = array<i64: 24, 128>}]} {
    %c0 = arith.constant 0 : index
    %c0_0 = arith.constant 0 : index
    %0 = vector.load %arg1[%c0, %c0_0] : memref<24x128xf32, #tpu.memory_space<vmem>>, vector<24x128xf32>
    %c0_1 = arith.constant 0 : index
    %c0_2 = arith.constant 0 : index
    %1 = vector.load %arg2[%c0_1, %c0_2] : memref<128x512xf32, #tpu.memory_space<vmem>>, vector<128x512xf32>
    %cst = arith.constant dense<0.000000e+00> : vector<24x512xf32>
    %2 = tpu.matmul %0, %1, %cst {dimension_numbers = #tpu.dot_dimension_numbers<[1], [0], [0], [1], [0, 0, 1, 1], [], []>} : vector<24x128xf32>, vector<128x512xf32>, vector<24x512xf32> -> vector<24x512xf32>
    %c0_3 = arith.constant 0 : index
    %c0_4 = arith.constant 0 : index
    %3 = vector.load %arg3[%c0_3, %c0_4] : memref<1x512xf32, #tpu.memory_space<vmem>>, vector<1x512xf32>
    %4 = vector.broadcast %3 : vector<1x512xf32> to vector<24x512xf32>
    %5 = arith.addf %2, %4 : vector<24x512xf32>
    %cst_5 = arith.constant 5.000000e-01 : f32
    %6 = vector.broadcast %cst_5 : f32 to vector<24x512xf32>
    %7 = arith.mulf %6, %5 : vector<24x512xf32>
    %cst_6 = arith.constant 0.707106769 : f32
    %8 = vector.broadcast %cst_6 : f32 to vector<24x512xf32>
    %9 = arith.mulf %5, %8 : vector<24x512xf32>
    %10 = math.erf %9 : vector<24x512xf32>
    %cst_7 = arith.constant 1.000000e+00 : f32
    %11 = vector.broadcast %cst_7 : f32 to vector<24x512xf32>
    %12 = arith.addf %11, %10 : vector<24x512xf32>
    %13 = arith.mulf %7, %12 : vector<24x512xf32>
    %c0_8 = arith.constant 0 : index
    %c0_9 = arith.constant 0 : index
    %14 = vector.load %arg4[%c0_8, %c0_9] : memref<512x128xf32, #tpu.memory_space<vmem>>, vector<512x128xf32>
    %cst_10 = arith.constant dense<0.000000e+00> : vector<24x128xf32>
    %15 = tpu.matmul %13, %14, %cst_10 {dimension_numbers = #tpu.dot_dimension_numbers<[1], [0], [0], [1], [0, 0, 1, 1], [], []>} : vector<24x512xf32>, vector<512x128xf32>, vector<24x128xf32> -> vector<24x128xf32>
    %c0_11 = arith.constant 0 : index
    %c0_12 = arith.constant 0 : index
    %16 = vector.load %arg5[%c0_11, %c0_12] : memref<1x128xf32, #tpu.memory_space<vmem>>, vector<1x128xf32>
    %17 = vector.broadcast %16 : vector<1x128xf32> to vector<24x128xf32>
    %18 = arith.addf %15, %17 : vector<24x128xf32>
    %c0_13 = arith.constant 0 : index
    %c0_14 = arith.constant 0 : index
    %19 = vector.load %arg6[%c0_13, %c0_14] : memref<24x128xf32, #tpu.memory_space<vmem>>, vector<24x128xf32>
    tpu.vector_store %arg6[%c0_13, %c0_14], %18 {strides = array<i32>} : memref<24x128xf32, #tpu.memory_space<vmem>>, vector<24x128xf32>,
    return
  }
  func.func @transform_0(%arg0: i32) -> (i32, i32) {
    %c0_i32 = arith.constant 0 : i32
    %c0_i32_0 = arith.constant 0 : i32
    return %arg0, %c0_i32 : i32, i32
  }
  func.func @transform_1(%arg0: i32) -> (i32, i32) {
    %c0_i32 = arith.constant 0 : i32
    %c0_i32_0 = arith.constant 0 : i32
    %c0_i32_1 = arith.constant 0 : i32
    return %c0_i32, %c0_i32_0 : i32, i32
  }
  func.func @transform_2(%arg0: i32) -> (i32, i32) {
    %c0_i32 = arith.constant 0 : i32
    %c0_i32_0 = arith.constant 0 : i32
    %c0_i32_1 = arith.constant 0 : i32
    return %c0_i32, %c0_i32_0 : i32, i32
  }
  func.func @transform_3(%arg0: i32) -> (i32, i32) {
    %c0_i32 = arith.constant 0 : i32
    %c0_i32_0 = arith.constant 0 : i32
    %c0_i32_1 = arith.constant 0 : i32
    return %c0_i32, %c0_i32_0 : i32, i32
  }
  func.func @transform_4(%arg0: i32) -> (i32, i32) {
    %c0_i32 = arith.constant 0 : i32
    %c0_i32_0 = arith.constant 0 : i32
    %c0_i32_1 = arith.constant 0 : i32
    return %c0_i32, %c0_i32_0 : i32, i32
  }
  func.func @transform_5(%arg0: i32) -> (i32, i32) {
    %c0_i32 = arith.constant 0 : i32
    %c0_i32_0 = arith.constant 0 : i32
    return %arg0, %c0_i32 : i32, i32
  }
}

</mosaic_0001>

<bundles_post_ra>
// kernel: mlp_forward.1
= control target key start
LH: loop header
LB: loop body
LE: loop exit
PB: predicated region body
PF: predicated region fallthrough
CT: control target
= control target key end

     0   :  { %10 = vsyncpa [#allocation3], 0  ;;  %s846_s0 = inlined_call_operand.vmem [shape: f32[24,128], index: 0, kind: input, shape index: {}]   ;;  %s847_s1 = inlined_call_operand.hbm [shape: f32[128,512], index: 1, kind: input, shape index: {}]   ;;  %s848_s2 = inlined_call_operand.vmem [shape: f32[1,512], index: 2, kind: input, shape index: {}]   ;;  %s849_s3 = inlined_call_operand.hbm [shape: f32[512,128], index: 3, kind: input, shape index: {}]   ;;  %s850_s4 = inlined_call_operand.vmem [shape: f32[1,128], index: 4, kind: input, shape index: {}]   ;;  %s851_s5 = inlined_call_operand.vmem [shape: f32[24,128], index: 5, kind: output, shape index: {}]  }
   0x1   :  { %11 = vsyncpa [#allocation5], 0  ;;  %s761_s18 = smov [#allocation2]  }
   0x2   :  { %s19_s19 = sshll.u32 %s761_s18, 4  ;;  %s20_s19 = int_to_ptr.vmem [resolvable:$true] %s19_s19 }
   0x3   :  { %s725_s20 = scalar_lea.vmem %s20_s19, 8192  ;;  %p730_p1 = scmp.lt.s32.totalorder %s20_s19, %s20_s19 }
   0x4   :  { %p726_p0 = scmp.ne.s32.totalorder %s20_s19, %s725_s20  ;;  %p731_p2 = scmp.lt.s32.totalorder %s725_s20, %s725_s20 }
   0x6   :  { %p732_p3 = por %p731_p2, %p730_p1 }
   0x8   :  { %p733_p4 = pnand %p732_p3, %p726_p0 }
   0xa   :  { %736 = shalt.err (!%p733_p4)
}
   0xb   :  { %s762_s21 = smov 512   ;;  %s763_s22 = smov 32  }
   0xc   :  { %25 = dma.hbm_to_vmem [thread:$0]  %s847_s1, 8192, %s20_s19, [#allocation3], %s762_s21, %s762_s21, %s763_s22  }
   0xd   :  { %s764_s25 = smov [#allocation4]  }
   0xe   :  { %s33_s26 = sshll.u32 %s764_s25, 4  ;;  %s34_s26 = int_to_ptr.vmem [resolvable:$true] %s33_s26 }
   0xf   :  { %s745_s27 = scalar_lea.vmem %s34_s26, 8192  ;;  %p750_p6 = scmp.lt.s32.totalorder %s34_s26, %s34_s26 }
  0x10   :  { %p746_p5 = scmp.ne.s32.totalorder %s34_s26, %s745_s27  ;;  %p751_p7 = scmp.lt.s32.totalorder %s745_s27, %s745_s27 }
  0x12   :  { %p752_p8 = por %p751_p7, %p750_p6 }
  0x14   :  { %p753_p9 = pnand %p752_p8, %p746_p5 }
  0x16   :  { %756 = shalt.err (!%p753_p9)
}
  0x17   :  { %s765_s28 = smov 128   ;;  %s766_s29 = smov 8  }
  0x18   :  { %39 = dma.hbm_to_vmem [thread:$0]  %s849_s3, 8192, %s34_s26, [#allocation5], %s765_s28, %s765_s28, %s766_s29  }
  0x19   :  { %757 = dma.done.wait [#allocation3], 8192  }
  0x1a   :  { %758 = vsyncadd [#allocation3], 4294959104 }
  0x1b   :  { %759 = dma.done.wait [#allocation5], 8192  }
  0x1c   :  { %760 = vsyncadd [#allocation5], 4294959104  ;;  %v767_v0 = vmov 0.0   ;;  %v112_v1 = vld [vmem:[#allocation2 + $0x1e8] sm:$0xff]  ;;  %v114_v2 = vld [vmem:[#allocation2 + $0x1f8] sm:$0xff] }
  0x1d   :  { %201 = vmatprep.mubr.f32.mxu0 %v767_v0  ;;  %284 = vmatprep.mubr.f32.mxu1 %v767_v0  ;;  %v111_v3 = vld [vmem:[#allocation2 + $0x1e0] sm:$0xff]  ;;  %v113_v4 = vld [vmem:[#allocation2 + $0x1f0] sm:$0xff]  ;;  %v108_v5 = vld [vmem:[#allocation2 + $0x1c8] sm:$0xff] }
  0x1e   :  { %137 = vmatprep.subr.mxu0 %v112_v1  ;;  %220 = vmatprep.subr.mxu1 %v114_v2  ;;  %v110_v6 = vld [vmem:[#allocation2 + $0x1d8] sm:$0xff]  ;;  %v107_v7 = vld [vmem:[#allocation2 + $0x1c0] sm:$0xff]  ;;  %v109_v8 = vld [vmem:[#allocation2 + $0x1d0] sm:$0xff] }
  0x1f   :  { %138 = vmatpush1.msra.mxu0 %v111_v3  ;;  %221 = vmatpush1.msra.mxu1 %v113_v4  ;;  %v104_v9 = vld [vmem:[#allocation2 + $0x1a8] sm:$0xff]  ;;  %v106_v10 = vld [vmem:[#allocation2 + $0x1b8] sm:$0xff]  ;;  %v103_v11 = vld [vmem:[#allocation2 + $0x1a0] sm:$0xff] }
  0x20   :  { %139 = vmatprep.subr.mxu0 %v108_v5  ;;  %222 = vmatprep.subr.mxu1 %v110_v6  ;;  %v105_v12 = vld [vmem:[#allocation2 + $0x1b0] sm:$0xff]  ;;  %v100_v13 = vld [vmem:[#allocation2 + $0x188] sm:$0xff]  ;;  %v102_v14 = vld [vmem:[#allocation2 + $0x198] sm:$0xff] }
  0x21   :  { %140 = vmatpush1.msra.mxu0 %v107_v7  ;;  %223 = vmatpush1.msra.mxu1 %v109_v8  ;;  %v99_v15 = vld [vmem:[#allocation2 + $0x180] sm:$0xff]  ;;  %v101_v16 = vld [vmem:[#allocation2 + $0x190] sm:$0xff]  ;;  %v96_v17 = vld [vmem:[#allocation2 + $0x168] sm:$0xff] }
  0x22   :  { %141 = vmatprep.subr.mxu0 %v104_v9  ;;  %224 = vmatprep.subr.mxu1 %v106_v10  ;;  %v98_v18 = vld [vmem:[#allocation2 + $0x178] sm:$0xff]  ;;  %v95_v19 = vld [vmem:[#allocation2 + $0x160] sm:$0xff]  ;;  %v97_v20 = vld [vmem:[#allocation2 + $0x170] sm:$0xff] }
  0x23   :  { %142 = vmatpush1.msra.mxu0 %v103_v11  ;;  %225 = vmatpush1.msra.mxu1 %v105_v12  ;;  %v92_v21 = vld [vmem:[#allocation2 + $0x148] sm:$0xff]  ;;  %v94_v22 = vld [vmem:[#allocation2 + $0x158] sm:$0xff]  ;;  %v91_v23 = vld [vmem:[#allocation2 + $0x140] sm:$0xff] }
  0x24   :  { %143 = vmatprep.subr.mxu0 %v100_v13  ;;  %226 = vmatprep.subr.mxu1 %v102_v14  ;;  %v93_v24 = vld [vmem:[#allocation2 + $0x150] sm:$0xff]  ;;  %v88_v25 = vld [vmem:[#allocation2 + $0x128] sm:$0xff]  ;;  %v90_v26 = vld [vmem:[#allocation2 + $0x138] sm:$0xff] }
  0x25   :  { %144 = vmatpush1.msra.mxu0 %v99_v15  ;;  %227 = vmatpush1.msra.mxu1 %v101_v16  ;;  %v87_v27 = vld [vmem:[#allocation2 + $0x120] sm:$0xff]  ;;  %v89_v28 = vld [vmem:[#allocation2 + $0x130] sm:$0xff]  ;;  %v84_v29 = vld [vmem:[#allocation2 + $0x108] sm:$0xff] }
  0x26   :  { %145 = vmatprep.subr.mxu0 %v96_v17  ;;  %228 = vmatprep.subr.mxu1 %v98_v18  ;;  %v86_v30 = vld [vmem:[#allocation2 + $0x118] sm:$0xff]  ;;  %v83_v31 = vld [vmem:[#allocation2 + $0x100] sm:$0xff]  ;;  %v85_v32 = vld [vmem:[#allocation2 + $0x110] sm:$0xff] }
  0x27   :  { %146 = vmatpush1.msra.mxu0 %v95_v19  ;;  %229 = vmatpush1.msra.mxu1 %v97_v20  ;;  %v80_v33 = vld [vmem:[#allocation2 + $0xe8] sm:$0xff]  ;;  %v82_v34 = vld [vmem:[#allocation2 + $0xf8] sm:$0xff]  ;;  %v79_v35 = vld [vmem:[#allocation2 + $0xe0] sm:$0xff] }
  0x28   :  { %147 = vmatprep.subr.mxu0 %v92_v21  ;;  %230 = vmatprep.subr.mxu1 %v94_v22  ;;  %v81_v36 = vld [vmem:[#allocation2 + $0xf0] sm:$0xff]  ;;  %v76_v37 = vld [vmem:[#allocation2 + $0xc8] sm:$0xff]  ;;  %v78_v38 = vld [vmem:[#allocation2 + $0xd8] sm:$0xff] }
  0x29   :  { %148 = vmatpush1.msra.mxu0 %v91_v23  ;;  %231 = vmatpush1.msra.mxu1 %v93_v24  ;;  %v75_v39 = vld [vmem:[#allocation2 + $0xc0] sm:$0xff]  ;;  %v77_v40 = vld [vmem:[#allocation2 + $0xd0] sm:$0xff]  ;;  %v72_v41 = vld [vmem:[#allocation2 + $0xa8] sm:$0xff] }
  0x2a   :  { %149 = vmatprep.subr.mxu0 %v88_v25  ;;  %232 = vmatprep.subr.mxu1 %v90_v26  ;;  %v74_v42 = vld [vmem:[#allocation2 + $0xb8] sm:$0xff]  ;;  %v71_v43 = vld [vmem:[#allocation2 + $0xa0] sm:$0xff]  ;;  %v73_v44 = vld [vmem:[#allocation2 + $0xb0] sm:$0xff] }
  0x2b   :  { %150 = vmatpush1.msra.mxu0 %v87_v27  ;;  %233 = vmatpush1.msra.mxu1 %v89_v28  ;;  %v68_v45 = vld [vmem:[#allocation2 + $0x88] sm:$0xff]  ;;  %v70_v46 = vld [vmem:[#allocation2 + $0x98] sm:$0xff]  ;;  %v67_v47 = vld [vmem:[#allocation2 + $0x80] sm:$0xff] }
  0x2c   :  { %151 = vmatprep.subr.mxu0 %v84_v29  ;;  %234 = vmatprep.subr.mxu1 %v86_v30  ;;  %v69_v48 = vld [vmem:[#allocation2 + $0x90] sm:$0xff]  ;;  %v64_v49 = vld [vmem:[#allocation2 + $0x68] sm:$0xff]  ;;  %v66_v50 = vld [vmem:[#allocation2 + $0x78] sm:$0xff] }
  0x2d   :  { %152 = vmatpush1.msra.mxu0 %v83_v31  ;;  %235 = vmatpush1.msra.mxu1 %v85_v32  ;;  %v63_v51 = vld [vmem:[#allocation2 + $0x60] sm:$0xff]  ;;  %v65_v52 = vld [vmem:[#allocation2 + $0x70] sm:$0xff]  ;;  %v60_v53 = vld [vmem:[#allocation2 + $0x48] sm:$0xff] }
  0x2e   :  { %153 = vmatprep.subr.mxu0 %v80_v33  ;;  %236 = vmatprep.subr.mxu1 %v82_v34  ;;  %v62_v54 = vld [vmem:[#allocation2 + $0x58] sm:$0xff]  ;;  %v59_v55 = vld [vmem:[#allocation2 + $0x40] sm:$0xff]  ;;  %v61_v56 = vld [vmem:[#allocation2 + $0x50] sm:$0xff] }
  0x2f   :  { %154 = vmatpush1.msra.mxu0 %v79_v35  ;;  %237 = vmatpush1.msra.mxu1 %v81_v36  ;;  %v56_v57 = vld [vmem:[#allocation2 + $0x28] sm:$0xff]  ;;  %v58_v58 = vld [vmem:[#allocation2 + $0x38] sm:$0xff]  ;;  %v55_v59 = vld [vmem:[#allocation2 + $0x20] sm:$0xff] }
  0x30   :  { %155 = vmatprep.subr.mxu0 %v76_v37  ;;  %238 = vmatprep.subr.mxu1 %v78_v38  ;;  %v57_v60 = vld [vmem:[#allocation2 + $0x30] sm:$0xff]  ;;  %v52_v61 = vld [vmem:[#allocation2 + $0x8] sm:$0xff]  ;;  %v54_v62 = vld [vmem:[#allocation2 + $0x18] sm:$0xff] }
  0x31   :  { %156 = vmatpush1.msra.mxu0 %v75_v39  ;;  %239 = vmatpush1.msra.mxu1 %v77_v40  ;;  %v51_v63 = vld [vmem:[#allocation2] sm:$0xff]  ;;  %v53_v1 = vld [vmem:[#allocation2 + $0x10] sm:$0xff]  ;;  %v394_v3 = vld [vmem:[#allocation4 + $0xf8] sm:$0xff] }
  0x32   :  { %157 = vmatprep.subr.mxu0 %v72_v41  ;;  %240 = vmatprep.subr.mxu1 %v74_v42  ;;  %v48_v2 = vld [vmem:[%s846_s0] sm:$0xff]  ;;  %v426_v4 = vld [vmem:[#allocation4 + $0x1f8] sm:$0xff]  ;;  %v49_v7 = vld [vmem:[%s846_s0 + $0x8] sm:$0xff] }
  0x33   :  { %158 = vmatpush1.msra.mxu0 %v71_v43  ;;  %241 = vmatpush1.msra.mxu1 %v73_v44  ;;  %v378_v5 = vld [vmem:[#allocation4 + $0x78] sm:$0xff]  ;;  %v393_v8 = vld [vmem:[#allocation4 + $0xf0] sm:$0xff]  ;;  %v392_v13 = vld [vmem:[#allocation4 + $0xe8] sm:$0xff] }
  0x34   :  { %159 = vmatprep.subr.mxu0 %v68_v45  ;;  %242 = vmatprep.subr.mxu1 %v70_v46  ;;  %v410_v6 = vld [vmem:[#allocation4 + $0x178] sm:$0xff]  ;;  %v425_v9 = vld [vmem:[#allocation4 + $0x1f0] sm:$0xff]  ;;  %v424_v14 = vld [vmem:[#allocation4 + $0x1e8] sm:$0xff] }
  0x35   :  { %160 = vmatpush1.msra.mxu0 %v67_v47  ;;  %243 = vmatpush1.msra.mxu1 %v69_v48  ;;  %v377_v10 = vld [vmem:[#allocation4 + $0x70] sm:$0xff]  ;;  %v376_v15 = vld [vmem:[#allocation4 + $0x68] sm:$0xff]  ;;  %v391_v17 = vld [vmem:[#allocation4 + $0xe0] sm:$0xff] }
  0x36   :  { %161 = vmatprep.subr.mxu0 %v64_v49  ;;  %244 = vmatprep.subr.mxu1 %v66_v50  ;;  %v409_v11 = vld [vmem:[#allocation4 + $0x170] sm:$0xff]  ;;  %v408_v16 = vld [vmem:[#allocation4 + $0x168] sm:$0xff]  ;;  %v375_v18 = vld [vmem:[#allocation4 + $0x60] sm:$0xff] }
  0x37   :  { %162 = vmatpush1.msra.mxu0 %v63_v51  ;;  %245 = vmatpush1.msra.mxu1 %v65_v52  ;;  %v50_v12 = vld [vmem:[%s846_s0 + $0x10] sm:$0xff]  ;;  %v407_v19 = vld [vmem:[#allocation4 + $0x160] sm:$0xff]  ;;  %v390_v20 = vld [vmem:[#allocation4 + $0xd8] sm:$0xff] }
  0x38   :  { %163 = vmatprep.subr.mxu0 %v60_v53  ;;  %246 = vmatprep.subr.mxu1 %v62_v54  ;;  %v422_v21 = vld [vmem:[#allocation4 + $0x1d8] sm:$0xff]  ;;  %v389_v24 = vld [vmem:[#allocation4 + $0xd0] sm:$0xff]  ;;  %v388_v28 = vld [vmem:[#allocation4 + $0xc8] sm:$0xff] }
  0x39   :  { %164 = vmatpush1.msra.mxu0 %v59_v55  ;;  %247 = vmatpush1.msra.mxu1 %v61_v56  ;;  %v374_v22 = vld [vmem:[#allocation4 + $0x58] sm:$0xff]  ;;  %v421_v25 = vld [vmem:[#allocation4 + $0x1d0] sm:$0xff]  ;;  %v420_v29 = vld [vmem:[#allocation4 + $0x1c8] sm:$0xff] }
  0x3a   :  { %165 = vmatprep.subr.mxu0 %v56_v57  ;;  %248 = vmatprep.subr.mxu1 %v58_v58  ;;  %v406_v23 = vld [vmem:[#allocation4 + $0x158] sm:$0xff]  ;;  %v373_v26 = vld [vmem:[#allocation4 + $0x50] sm:$0xff]  ;;  %v372_v30 = vld [vmem:[#allocation4 + $0x48] sm:$0xff] }
  0x3b   :  { %166 = vmatpush1.msra.mxu0 %v55_v59  ;;  %249 = vmatpush1.msra.mxu1 %v57_v60  ;;  %v405_v27 = vld [vmem:[#allocation4 + $0x150] sm:$0xff]  ;;  %v404_v31 = vld [vmem:[#allocation4 + $0x148] sm:$0xff]  ;;  %v387_v32 = vld [vmem:[#allocation4 + $0xc0] sm:$0xff] }
  0x3c   :  { %167 = vmatprep.subr.mxu0 %v52_v61  ;;  %250 = vmatprep.subr.mxu1 %v54_v62  ;;  %v419_v33 = vld [vmem:[#allocation4 + $0x1c0] sm:$0xff]  ;;  %v386_v36 = vld [vmem:[#allocation4 + $0xb8] sm:$0xff]  ;;  %v385_v40 = vld [vmem:[#allocation4 + $0xb0] sm:$0xff] }
  0x3d   :  { %168 = vmatpush1.msra.mxu0 %v51_v63  ;;  %251 = vmatpush1.msra.mxu1 %v53_v1  ;;  %v371_v34 = vld [vmem:[#allocation4 + $0x40] sm:$0xff]  ;;  %v418_v37 = vld [vmem:[#allocation4 + $0x1b8] sm:$0xff]  ;;  %v417_v41 = vld [vmem:[#allocation4 + $0x1b0] sm:$0xff] }
  0x3e   :  { %202 = vmatmul.mubr.f32.vlgmr.msra.gmra.mxu0 %v48_v2  ;;  %285 = vmatmul.mubr.f32.vlgmr.msra.gmra.mxu1 %v48_v2  ;;  %v403_v35 = vld [vmem:[#allocation4 + $0x140] sm:$0xff]  ;;  %v370_v38 = vld [vmem:[#allocation4 + $0x38] sm:$0xff]  ;;  %v369_v42 = vld [vmem:[#allocation4 + $0x30] sm:$0xff] }
  0x3f   :  { %207 = vmatprep.mubr.f32.mxu0 %v767_v0  ;;  %290 = vmatprep.mubr.f32.mxu1 %v767_v0  ;;  %v402_v39 = vld [vmem:[#allocation4 + $0x138] sm:$0xff]  ;;  %v401_v43 = vld [vmem:[#allocation4 + $0x130] sm:$0xff]  ;;  %v384_v44 = vld [vmem:[#allocation4 + $0xa8] sm:$0xff] }
  0x40   :  { %604 = vmatprep.subr.mxu0 %v394_v3  ;;  %645 = vmatprep.subr.mxu1 %v426_v4  ;;  %v416_v45 = vld [vmem:[#allocation4 + $0x1a8] sm:$0xff]  ;;  %v383_v48 = vld [vmem:[#allocation4 + $0xa0] sm:$0xff]  ;;  %v382_v52 = vld [vmem:[#allocation4 + $0x98] sm:$0xff] }
  0x41   :  { %605 = vmatpush3.msra.mxu0 %v378_v5  ;;  %646 = vmatpush3.msra.mxu1 %v410_v6  ;;  %v368_v46 = vld [vmem:[#allocation4 + $0x28] sm:$0xff]  ;;  %v415_v49 = vld [vmem:[#allocation4 + $0x1a0] sm:$0xff]  ;;  %v414_v53 = vld [vmem:[#allocation4 + $0x198] sm:$0xff]  ;;  %v117_v5 = vlaneseq }
  0x42   :  { %208 = vmatmul.mubr.f32.gmra.mxu0 %v49_v7  ;;  %291 = vmatmul.mubr.f32.gmra.mxu1 %v49_v7  ;;  %v400_v47 = vld [vmem:[#allocation4 + $0x128] sm:$0xff]  ;;  %v367_v50 = vld [vmem:[#allocation4 + $0x20] sm:$0xff]  ;;  %v366_v54 = vld [vmem:[#allocation4 + $0x18] sm:$0xff] }
  0x43   :  { %213 = vmatprep.mubr.f32.mxu0 %v767_v0  ;;  %296 = vmatprep.mubr.f32.mxu1 %v767_v0  ;;  %v423_v0 = vld [vmem:[#allocation4 + $0x1e0] sm:$0xff]  ;;  %v398_v55 = vld [vmem:[#allocation4 + $0x118] sm:$0xff]  ;;  %v381_v56 = vld [vmem:[#allocation4 + $0x90] sm:$0xff]  ;;  %v118_v6 = vshrl.u32 %v117_v5, 7 }
  0x44   :  { %606 = vmatprep.subr.mxu0 %v393_v8  ;;  %647 = vmatprep.subr.mxu1 %v425_v9  ;;  %v399_v51 = vld [vmem:[#allocation4 + $0x120] sm:$0xff]  ;;  %v413_v57 = vld [vmem:[#allocation4 + $0x190] sm:$0xff]  ;;  %v380_v60 = vld [vmem:[#allocation4 + $0x88] sm:$0xff] }
  0x45   :  { %607 = vmatpush3.msra.mxu0 %v377_v10  ;;  %648 = vmatpush3.msra.mxu1 %v409_v11  ;;  %v365_v58 = vld [vmem:[#allocation4 + $0x10] sm:$0xff]  ;;  %v412_v61 = vld [vmem:[#allocation4 + $0x188] sm:$0xff]  ;;  %v379_v1 = vld [vmem:[#allocation4 + $0x80] sm:$0xff]  ;;  %v119_v7 = vsub.s32 0, %v118_v6  ;;  %v127_v8 = vsub.s32 2, %v118_v6  ;;  %v123_v10 = vsub.s32 1, %v118_v6 }
  0x46   :  { %214 = vmatmul.mubr.f32.gmra.mxu0 %v50_v12  ;;  %297 = vmatmul.mubr.f32.gmra.mxu1 %v50_v12  ;;  %v397_v59 = vld [vmem:[#allocation4 + $0x110] sm:$0xff]  ;;  %v364_v62 = vld [vmem:[#allocation4 + $0x8] sm:$0xff]  ;;  %v411_v2 = vld [vmem:[#allocation4 + $0x180] sm:$0xff]  ;;  %v131_v11 = vsub.s32 3, %v118_v6 }
  0x47   :  { %608 = vmatprep.subr.mxu0 %v392_v13  ;;  %649 = vmatprep.subr.mxu1 %v424_v14  ;;  %v396_v63 = vld [vmem:[#allocation4 + $0x108] sm:$0xff]  ;;  %v363_v3 = vld [vmem:[#allocation4] sm:$0xff] }
  0x48   :  { %609 = vmatpush3.msra.mxu0 %v376_v15  ;;  %650 = vmatpush3.msra.mxu1 %v408_v16  ;;  %v395_v4 = vld [vmem:[#allocation4 + $0x100] sm:$0xff] }
  0x49   :  { %610 = vmatprep.subr.mxu0 %v391_v17  ;;  %651 = vmatprep.subr.mxu1 %v423_v0  ;;  %v115_v9 = vld [vmem:[%s848_s2] sm:$0xf] }
  0x4a   :  { %611 = vmatpush3.msra.mxu0 %v375_v18  ;;  %652 = vmatpush3.msra.mxu1 %v407_v19  ;;  %v120_v12 = vrot.slane %v115_v9, %v119_v7  ;;  %v128_v13 = vrot.slane %v115_v9, %v127_v8  ;;  %v124_v16 = vrot.slane %v115_v9, %v123_v10 }
  0x4b   :  { %612 = vmatprep.subr.mxu0 %v390_v20  ;;  %653 = vmatprep.subr.mxu1 %v422_v21  ;;  %v132_v17 = vrot.slane %v115_v9, %v131_v11 }
  0x4c   :  { %613 = vmatpush3.msra.mxu0 %v374_v22  ;;  %654 = vmatpush3.msra.mxu1 %v406_v23 }
  0x4d   :  { %614 = vmatprep.subr.mxu0 %v389_v24  ;;  %655 = vmatprep.subr.mxu1 %v421_v25 }
  0x4e   :  { %615 = vmatpush3.msra.mxu0 %v373_v26  ;;  %656 = vmatpush3.msra.mxu1 %v405_v27 }
  0x4f   :  { %616 = vmatprep.subr.mxu0 %v388_v28  ;;  %657 = vmatprep.subr.mxu1 %v420_v29 }
  0x50   :  { %617 = vmatpush3.msra.mxu0 %v372_v30  ;;  %658 = vmatpush3.msra.mxu1 %v404_v31 }
  0x51   :  { %618 = vmatprep.subr.mxu0 %v387_v32  ;;  %659 = vmatprep.subr.mxu1 %v419_v33 }
  0x52   :  { %619 = vmatpush3.msra.mxu0 %v371_v34  ;;  %660 = vmatpush3.msra.mxu1 %v403_v35 }
  0x53   :  { %620 = vmatprep.subr.mxu0 %v386_v36  ;;  %661 = vmatprep.subr.mxu1 %v418_v37 }
  0x54   :  { %621 = vmatpush3.msra.mxu0 %v370_v38  ;;  %662 = vmatpush3.msra.mxu1 %v402_v39 }
  0x55   :  { %622 = vmatprep.subr.mxu0 %v385_v40  ;;  %663 = vmatprep.subr.mxu1 %v417_v41 }
  0x56   :  { %623 = vmatpush3.msra.mxu0 %v369_v42  ;;  %664 = vmatpush3.msra.mxu1 %v401_v43 }
  0x57   :  { %624 = vmatprep.subr.mxu0 %v384_v44  ;;  %665 = vmatprep.subr.mxu1 %v416_v45 }
  0x58   :  { %625 = vmatpush3.msra.mxu0 %v368_v46  ;;  %666 = vmatpush3.msra.mxu1 %v400_v47 }
  0x59   :  { %626 = vmatprep.subr.mxu0 %v383_v48  ;;  %667 = vmatprep.subr.mxu1 %v415_v49 }
  0x5a   :  { %627 = vmatpush3.msra.mxu0 %v367_v50  ;;  %668 = vmatpush3.msra.mxu1 %v399_v51 }
  0x5b   :  { %628 = vmatprep.subr.mxu0 %v382_v52  ;;  %669 = vmatprep.subr.mxu1 %v414_v53 }
  0x5c   :  { %629 = vmatpush3.msra.mxu0 %v366_v54  ;;  %670 = vmatpush3.msra.mxu1 %v398_v55 }
  0x5d   :  { %630 = vmatprep.subr.mxu0 %v381_v56  ;;  %671 = vmatprep.subr.mxu1 %v413_v57 }
  0x5e   :  { %631 = vmatpush3.msra.mxu0 %v365_v58  ;;  %672 = vmatpush3.msra.mxu1 %v397_v59 }
  0x5f   :  { %632 = vmatprep.subr.mxu0 %v380_v60  ;;  %673 = vmatprep.subr.mxu1 %v412_v61 }
  0x60   :  { %633 = vmatpush3.msra.mxu0 %v364_v62  ;;  %674 = vmatpush3.msra.mxu1 %v396_v63 }
  0x61   :  { %634 = vmatprep.subr.mxu0 %v379_v1  ;;  %675 = vmatprep.subr.mxu1 %v411_v2 }
  0x62   :  { %635 = vmatpush3.msra.mxu0 %v363_v3  ;;  %676 = vmatpush3.msra.mxu1 %v395_v4 }
  0xfe   :  { %v203_v14 = vpop.f32.mrf.mxu0  ;;  %v286_v15 = vpop.f32.mrf.mxu1 }
  0xff   :  { %v204_v0 = vadd.f32 %v203_v14, %v120_v12  ;;  %v287_v18 = vadd.f32 %v286_v15, %v128_v13 }
 0x100   :  { %v205_v19 = vpop.f32.mrf.mxu0  ;;  %v288_v20 = vpop.f32.mrf.mxu1 }
 0x101   :  { %v315_v21 = vmul.f32 0.70710677, %v204_v0  ;;  %v317_v22 = vmul.f32 0.70710677, %v287_v18  ;;  %v206_v23 = vadd.f32 %v205_v19, %v124_v16  ;;  %v289_v24 = vadd.f32 %v288_v20, %v132_v17 }
 0x102   :  { %v209_v25 = vpop.f32.mrf.mxu0  ;;  %v292_v26 = vpop.f32.mrf.mxu1  ;;  %v303_v60 = vmul.f32 0.5, %v204_v0  ;;  %v305_v1 = vmul.f32 0.5, %v287_v18 }
 0x103   :  { %693 = verf.f32 %v315_v21  ;;  %v210_v27 = vadd.f32 %v209_v25, %v120_v12  ;;  %v822_v28 = vadd.f32 %v292_v26, %v128_v13  ;;  %v316_v29 = vmul.f32 0.70710677, %v206_v23 }
 0x104   :  { %695 = verf.f32 %v317_v22  ;;  %v211_v30 = vpop.f32.mrf.mxu0  ;;  %v294_v31 = vpop.f32.mrf.mxu1  ;;  %v318_v32 = vmul.f32 0.70710677, %v289_v24  ;;  %v304_v57 = vmul.f32 0.5, %v206_v23  ;;  %v306_v61 = vmul.f32 0.5, %v289_v24 }
 0x105   :  { %v319_v33 = vmul.f32 0.70710677, %v210_v27  ;;  %697 = verf.f32 %v316_v29  ;;  %v321_v34 = vmul.f32 0.70710677, %v822_v28  ;;  %v212_v35 = vadd.f32 %v211_v30, %v124_v16 }
 0x106   :  { %v295_v36 = vadd.f32 %v294_v31, %v132_v17  ;;  %v215_v37 = vpop.f32.mrf.mxu0  ;;  %v298_v38 = vpop.f32.mrf.mxu1  ;;  %699 = verf.f32 %v318_v32 }
 0x107   :  { %v825_v39 = vadd.f32 %v215_v37, %v120_v12  ;;  %v827_v40 = vadd.f32 %v298_v38, %v128_v13  ;;  %701 = verf.f32 %v319_v33  ;;  %v320_v41 = vmul.f32 0.70710677, %v212_v35  ;;  %v603_v37 = vld [vmem:[%s850_s4] ss:$0 sm:$0xff] }
 0x108   :  { %v217_v42 = vpop.f32.mrf.mxu0  ;;  %v300_v43 = vpop.f32.mrf.mxu1  ;;  %703 = verf.f32 %v321_v34  ;;  %v322_v44 = vmul.f32 0.70710677, %v295_v36  ;;  %v308_v9 = vmul.f32 0.5, %v212_v35  ;;  %v307_v13 = vmul.f32 0.5, %v210_v27 }
 0x109   :  { %v323_v45 = vmul.f32 0.70710677, %v825_v39  ;;  %705 = verf.f32 %v320_v41  ;;  %v325_v46 = vmul.f32 0.70710677, %v827_v40  ;;  %v218_v47 = vadd.f32 %v217_v42, %v124_v16 }
 0x10a   :  { %707 = verf.f32 %v322_v44  ;;  %v301_v48 = vadd.f32 %v300_v43, %v132_v17  ;;  %v310_v14 = vmul.f32 0.5, %v295_v36  ;;  %v309_v17 = vmul.f32 0.5, %v822_v28 }
 0x10b   :  { %709 = verf.f32 %v323_v45  ;;  %v324_v49 = vmul.f32 0.70710677, %v218_v47  ;;  %v312_v23 = vmul.f32 0.5, %v218_v47  ;;  %v311_v27 = vmul.f32 0.5, %v825_v39 }
 0x10c   :  { %711 = verf.f32 %v325_v46  ;;  %v326_v50 = vmul.f32 0.70710677, %v301_v48  ;;  %v314_v29 = vmul.f32 0.5, %v301_v48  ;;  %v313_v28 = vmul.f32 0.5, %v827_v40 }
 0x10d   :  { %713 = verf.f32 %v324_v49 }
 0x10e   :  { %715 = verf.f32 %v326_v50 }
 0x110   :  { %v694_v51 = vpop.eup %693 }
 0x111   :  { %v696_v52 = vpop.eup %695  ;;  %v339_v54 = vadd.f32 1.0, %v694_v51 }
 0x112   :  { %v698_v53 = vpop.eup %697  ;;  %v341_v56 = vadd.f32 1.0, %v696_v52 }
 0x113   :  { %v700_v55 = vpop.eup %699  ;;  %v340_v58 = vadd.f32 1.0, %v698_v53  ;;  %v351_v4 = vmul.f32 %v339_v54, %v303_v60 }
 0x114   :  { %v702_v59 = vpop.eup %701  ;;  %v342_v62 = vadd.f32 1.0, %v700_v55  ;;  %v353_v8 = vmul.f32 %v341_v56, %v305_v1 }
 0x115   :  { %v704_v63 = vpop.eup %703  ;;  %v352_v2 = vmul.f32 %v340_v58, %v304_v57  ;;  %v343_v6 = vadd.f32 1.0, %v702_v59 }
 0x116   :  { %v706_v3 = vpop.eup %705  ;;  %v354_v5 = vmul.f32 %v342_v62, %v306_v61  ;;  %v345_v11 = vadd.f32 1.0, %v704_v63 }
 0x117   :  { %v708_v7 = vpop.eup %707  ;;  %498 = vmatprep.mubr.f32.mxu0 %v352_v2  ;;  %v344_v10 = vadd.f32 1.0, %v706_v3  ;;  %v355_v20 = vmul.f32 %v343_v6, %v307_v13 }
 0x118   :  { %v710_v12 = vpop.eup %709  ;;  %578 = vmatprep.mubr.f32.mxu1 %v354_v5  ;;  %499 = vmatmul.mubr.f32.vlgmr.msra.gmra.mxu0 %v351_v4  ;;  %v346_v15 = vadd.f32 1.0, %v708_v7  ;;  %v357_v24 = vmul.f32 %v345_v11, %v309_v17 }
 0x119   :  { %v712_v16 = vpop.eup %711  ;;  %579 = vmatmul.mubr.f32.vlgmr.msra.gmra.mxu1 %v353_v8  ;;  %v356_v0 = vmul.f32 %v344_v10, %v308_v9  ;;  %v347_v21 = vadd.f32 1.0, %v710_v12 }
 0x11a   :  { %v714_v18 = vpop.eup %713  ;;  %v358_v19 = vmul.f32 %v346_v15, %v310_v14  ;;  %v349_v26 = vadd.f32 1.0, %v712_v16 }
 0x11b   :  { %v716_v22 = vpop.eup %715  ;;  %503 = vmatprep.mubr.f32.mxu0 %v356_v0  ;;  %v348_v25 = vadd.f32 1.0, %v714_v18  ;;  %v359_v33 = vmul.f32 %v347_v21, %v311_v27 }
 0x11c   :  { %583 = vmatprep.mubr.f32.mxu1 %v358_v19  ;;  %504 = vmatmul.mubr.f32.gmra.mxu0 %v355_v20  ;;  %v350_v30 = vadd.f32 1.0, %v716_v22  ;;  %v361_v34 = vmul.f32 %v349_v26, %v313_v28 }
 0x11d   :  { %584 = vmatmul.mubr.f32.gmra.mxu1 %v357_v24  ;;  %v360_v31 = vmul.f32 %v348_v25, %v312_v23 }
 0x11e   :  { %v362_v32 = vmul.f32 %v350_v30, %v314_v29 }
 0x11f   :  { %508 = vmatprep.mubr.f32.mxu0 %v360_v31 }
 0x120   :  { %588 = vmatprep.mubr.f32.mxu1 %v362_v32  ;;  %509 = vmatmul.mubr.f32.gmra.mxu0 %v359_v33 }
 0x121   :  { %589 = vmatmul.mubr.f32.gmra.mxu1 %v361_v34 }
 0x1d8   :  { %v636_v35 = vpop.f32.mrf.mxu0 }
 0x1d9   :  { %v677_v36 = vpop.f32.mrf.mxu1 }
 0x1da   :  { %v637_v38 = vpop.f32.mrf.mxu0 }
 0x1db   :  { %v638_v39 = vadd.f32 %v637_v38, %v636_v35  ;;  %v678_v41 = vpop.f32.mrf.mxu1 }
 0x1dc   :  { %v639_v42 = vpop.f32.mrf.mxu0  ;;  %v679_v43 = vadd.f32 %v678_v41, %v677_v36 }
 0x1dd   :  { %v501_v40 = vadd.f32 %v638_v39, %v603_v37  ;;  %v680_v44 = vpop.f32.mrf.mxu1 }
 0x1de   :  { %v640_v45 = vpop.f32.mrf.mxu0 }
 0x1df   :  { %v581_v46 = vadd.f32 %v679_v43, %v501_v40  ;;  %v641_v47 = vadd.f32 %v640_v45, %v639_v42  ;;  %v681_v48 = vpop.f32.mrf.mxu1 }
 0x1e0   :  { %v642_v49 = vpop.f32.mrf.mxu0  ;;  %v682_v51 = vadd.f32 %v681_v48, %v680_v44 }
 0x1e1   :  { %594 = vst [vmem:[%s851_s5] sm:$0xff] %v581_v46  ;;  %v506_v50 = vadd.f32 %v641_v47, %v603_v37  ;;  %v683_v52 = vpop.f32.mrf.mxu1 }
 0x1e2   :  { %v643_v53 = vpop.f32.mrf.mxu0 }
 0x1e3   :  { %v586_v54 = vadd.f32 %v682_v51, %v506_v50  ;;  %v644_v55 = vadd.f32 %v643_v53, %v642_v49  ;;  %v684_v56 = vpop.f32.mrf.mxu1 }
 0x1e4   :  { %v685_v58 = vadd.f32 %v684_v56, %v683_v52 }
 0x1e5   :  { %595 = vst [vmem:[%s851_s5 + $0x8] sm:$0xff] %v586_v54  ;;  %v511_v57 = vadd.f32 %v644_v55, %v603_v37 }
 0x1e7   :  { %v591_v59 = vadd.f32 %v685_v58, %v511_v57 }
 0x1e9   :  { %596 = vst [vmem:[%s851_s5 + $0x10] sm:$0xff] %v591_v59 }
 0x1ea   :  { %601 = vsyncpa [#allocation3], 1 }
 0x1eb   :  { %602 = vsyncpa [#allocation5], 1 }

</bundles_post_ra>
